<compile_context>
chip_gen: v5e
topology: v5e:2x2
jax: 0.10.0
libtpu: 0.0.40
codegen_flags: <defaults>
</compile_context>

<pallas_src>
import functools
import math

import jax
import jax.numpy as jnp
from jax.experimental import pallas as pl
from jax.experimental.pallas import tpu as pltpu


_LANES = 128
_SUBLANES = 8
_DEFAULT_TILE = 1024
# Safe on every generation: < v7x's 64 MiB physical VMEM, far under v5e/v6e's
# 128 MiB.  With K-tiling the actual per-layer footprint at the default tile
# is only a few MiB, so there is no need for generation-aware budgets.
_VMEM_LIMIT_BYTES = 48 * 1024 * 1024


def _round_up(x, m):
    return ((x + m - 1) // m) * m


def _vmem_bytes_estimate(tm, tk, f_in, f_out, adj_isz, x_isz, out_isz):
    """All pipeline buffers: double-buffered streamed operands + output,
    the f32 accumulator scratch, and the (tiny) resident W / bias."""
    adj_buf = 2 * tm * tk * adj_isz          # streamed adj tile
    x_buf = 2 * tk * f_in * x_isz            # streamed x row slice
    out_buf = 2 * tm * f_out * out_isz       # output tile
    acc = tm * f_out * 4                     # f32 accumulator scratch
    w_buf = 2 * f_in * f_out * 4             # resident W
    b_buf = 2 * _SUBLANES * f_out * 4        # resident bias row (padded)
    return adj_buf + x_buf + out_buf + acc + w_buf + b_buf


# --------------------------------------------------------------------------
# Fused per-layer kernel:  out = act( adj @ (x @ W) + b )
#   grid = (row tiles, K tiles over adj columns / x rows)
# --------------------------------------------------------------------------
def _gcn_layer_kernel(adj_ref, x_ref, w_ref, b_ref, out_ref, acc_ref, *,
                      apply_relu):
    k = pl.program_id(1)

    @pl.when(k == 0)
    def _():
        acc_ref[...] = jnp.zeros_like(acc_ref)

    # Support tile for this K slice: (tk, f_out) = x[k_tile] @ W.
    # Recomputed per (row, K) grid step; tiny vs. the adj matmul, and the
    # kernel is HBM-bound on adj so the MXU has slack (free filler).
    support = jnp.dot(x_ref[...], w_ref[...],
                      preferred_element_type=jnp.float32)
    support = support.astype(adj_ref.dtype)  # bf16 RHS when adj is bf16

    acc_ref[...] += jnp.dot(adj_ref[...], support,
                            preferred_element_type=jnp.float32)

    @pl.when(k == pl.num_programs(1) - 1)
    def _():
        r = acc_ref[...] + b_ref[...]
        if apply_relu:
            r = jnp.maximum(r, 0.0)
        out_ref[...] = r.astype(out_ref.dtype)


def _gcn_layer(adj_p, x_p, w_p, b_row, *, tm, tk, apply_relu, out_dtype):
    n_pad = adj_p.shape[0]
    f_in = x_p.shape[1]
    f_out = w_p.shape[1]
    assert n_pad % tm == 0 and n_pad % tk == 0

    est = _vmem_bytes_estimate(
        tm, tk, f_in, f_out,
        jnp.dtype(adj_p.dtype).itemsize,
        jnp.dtype(x_p.dtype).itemsize,
        jnp.dtype(out_dtype).itemsize,
    )
    assert est + (2 << 20) <= _VMEM_LIMIT_BYTES, (
        f"tile ({tm},{tk}) needs ~{est} B VMEM, over the "
        f"{_VMEM_LIMIT_BYTES} B limit")

    grid = (n_pad // tm, n_pad // tk)
    kernel = functools.partial(_gcn_layer_kernel, apply_relu=apply_relu)
    return pl.pallas_call(
        kernel,
        out_shape=jax.ShapeDtypeStruct((n_pad, f_out), out_dtype),
        grid_spec=pltpu.PrefetchScalarGridSpec(
            num_scalar_prefetch=0,
            grid=grid,
            in_specs=[
                # adj tile (streamed; dominant HBM traffic)
                pl.BlockSpec((tm, tk), lambda i, k: (i, k)),
                # x rows feeding this K slice's support tile
                pl.BlockSpec((tk, f_in), lambda i, k: (k, 0)),
                # full W (tiny, constant index -> resident)
                pl.BlockSpec((f_in, f_out), lambda i, k: (0, 0)),
                # bias row
                pl.BlockSpec((1, f_out), lambda i, k: (0, 0)),
            ],
            out_specs=pl.BlockSpec((tm, f_out), lambda i, k: (i, 0)),
            scratch_shapes=[pltpu.VMEM((tm, f_out), jnp.float32)],
        ),
        compiler_params=pltpu.CompilerParams(
            # Row tiles split across v7x's two TensorCores; the reduction axis
            # is last and "arbitrary" so the accumulator stays on one core.
            dimension_semantics=("parallel", "arbitrary"),
            vmem_limit_bytes=_VMEM_LIMIT_BYTES,
        ),
    )(adj_p, x_p, w_p, b_row)


# --------------------------------------------------------------------------
# Full 2-layer GCN forward
# --------------------------------------------------------------------------
@functools.partial(jax.jit,
                   static_argnames=("tm", "tk", "adj_dtype", "h_dtype"))
def gcn_forward(x, adj, w1, b1, w2, b2, *, tm=None, tk=None,
                adj_dtype=jnp.bfloat16, h_dtype=jnp.bfloat16):
    """h = relu(adj @ (x @ W1) + b1);  out = adj @ (h @ W2) + b2."""
    n, _ = x.shape
    hidden = w1.shape[1]
    out_dim = w2.shape[1]
    assert adj.shape == (n, n)

    hp = _round_up(hidden, _LANES)    # lane-dense hidden width
    op = _round_up(out_dim, _LANES)   # lane-dense output width

    base = _round_up(n, _LANES)
    if tm is None:
        tm = min(_DEFAULT_TILE, base)
    if tk is None:
        tk = min(_DEFAULT_TILE, base)
    assert tm % _SUBLANES == 0
    assert tk % _LANES == 0
    n_pad = _round_up(n, math.lcm(tm, tk))

    # Pad + downcast adj in one fused XLA pass (under jit).  bf16 adj halves
    # the dominant HBM traffic; accumulation stays f32 in the kernel.
    # TODO(synk): callers with a static graph should pre-pad/pre-cast adj once
    # outside the per-forward path to avoid even this single extra pass.
    adj_p = jnp.pad(adj, ((0, n_pad - n), (0, n_pad - n))).astype(adj_dtype)
    x_p = jnp.pad(x, ((0, n_pad - n), (0, 0)))
    w1_p = jnp.pad(w1, ((0, 0), (0, hp - hidden)))
    b1_p = jnp.pad(b1.reshape(1, -1), ((0, 0), (0, hp - hidden)))
    w2_p = jnp.pad(w2, ((0, hp - hidden), (0, op - out_dim)))
    b2_p = jnp.pad(b2.reshape(1, -1), ((0, 0), (0, op - out_dim)))

    # Layer 1: GraphConvolution(F_in -> hidden) + ReLU, emitted in h_dtype
    # (bf16 halves the h round-trip feeding layer 2).
    h = _gcn_layer(adj_p, x_p, w1_p, b1_p, tm=tm, tk=tk,
                   apply_relu=True, out_dtype=h_dtype)
    # Layer 2: GraphConvolution(hidden -> out_dim), f32 output.
    out = _gcn_layer(adj_p, h, w2_p, b2_p, tm=tm, tk=tk,
                     apply_relu=False, out_dtype=jnp.float32)

    return out[:n, :out_dim]


# --------------------------------------------------------------------------
# Parameter init (mirrors GraphConvolution.reset_parameters) and reference
# --------------------------------------------------------------------------
def init_gcn_params(key, num_features, hidden_channels, output_dim):
    """U(-stdv, stdv) with stdv = 1/sqrt(out_features), like the PyTorch module."""
    k1, k2, k3, k4 = jax.random.split(key, 4)
    stdv1 = 1.0 / math.sqrt(hidden_channels)
    stdv2 = 1.0 / math.sqrt(output_dim)
    w1 = jax.random.uniform(
        k1, (num_features, hidden_channels), jnp.float32, -stdv1, stdv1)
    b1 = jax.random.uniform(k2, (hidden_channels,), jnp.float32, -stdv1, stdv1)
    w2 = jax.random.uniform(
        k3, (hidden_channels, output_dim), jnp.float32, -stdv2, stdv2)
    b2 = jax.random.uniform(k4, (output_dim,), jnp.float32, -stdv2, stdv2)
    return w1, b1, w2, b2


def _reference_forward(x, adj, w1, b1, w2, b2):
    h = jnp.maximum(adj @ (x @ w1) + b1, 0.0)
    return adj @ (h @ w2) + b2


def _make_graph(key, n, num_features, density_thresh):
    kx, kadj = jax.random.split(key)
    x = jax.random.normal(kx, (n, num_features), jnp.float32)
    a = (jax.random.uniform(kadj, (n, n), jnp.float32) > density_thresh).astype(
        jnp.float32)
    a = jnp.maximum(a, a.T) + jnp.eye(n, dtype=jnp.float32)
    adj = a / jnp.sum(a, axis=1, keepdims=True)
    return x, adj


if __name__ == "__main__":
    NUM_FEATURES = 4
    HIDDEN = 32
    OUTPUT_DIM = 16

    # --- primary small case: N=8 nodes, single (1, 1) grid ---
    N = 8
    key = jax.random.PRNGKey(0)
    kgraph, kparams = jax.random.split(key)
    x, adj = _make_graph(kgraph, N, NUM_FEATURES, 0.5)
    params = init_gcn_params(kparams, NUM_FEATURES, HIDDEN, OUTPUT_DIM)
    ref = _reference_forward(x, adj, *params)

    # f32 verification path (exact semantics)
    out_f32 = jax.block_until_ready(
        gcn_forward(x, adj, *params,
                    adj_dtype=jnp.float32, h_dtype=jnp.float32))
    assert out_f32.shape == (N, OUTPUT_DIM)
    assert jnp.allclose(out_f32, ref, atol=1e-4, rtol=1e-4)

    # default perf path (bf16 adj / bf16 h, f32 accumulation)
    out_bf16 = jax.block_until_ready(gcn_forward(x, adj, *params))
    assert jnp.allclose(out_bf16, ref, atol=5e-2, rtol=5e-2)

    # --- secondary case: N=256, tm=tk=128 -> grid (2, 2); exercises both the
    #     row pipeline and the K-tiled accumulator (init / accumulate / store).
    N2 = 256
    key2 = jax.random.PRNGKey(1)
    kgraph2, kparams2 = jax.random.split(key2)
    x2, adj2 = _make_graph(kgraph2, N2, NUM_FEATURES, 0.9)
    p2 = init_gcn_params(kparams2, NUM_FEATURES, HIDDEN, OUTPUT_DIM)
    ref2 = _reference_forward(x2, adj2, *p2)

    out2_f32 = jax.block_until_ready(
        gcn_forward(x2, adj2, *p2, tm=128, tk=128,
                    adj_dtype=jnp.float32, h_dtype=jnp.float32))
    assert out2_f32.shape == (N2, OUTPUT_DIM)
    assert jnp.allclose(out2_f32, ref2, atol=1e-4, rtol=1e-4)

    out2 = jax.block_until_ready(gcn_forward(x2, adj2, *p2, tm=128, tk=128))
    assert jnp.allclose(out2, ref2, atol=5e-2, rtol=5e-2)

    print("KERNEL_OK")
</pallas_src>

<mosaic_0001>
module attributes {stable_mosaic.version = 11 : i64} {
  func.func @_gcn_layer_kernel(%arg0: i32, %arg1: i32, %arg2: memref<128x128xf32, #tpu.memory_space<vmem>>, %arg3: memref<128x4xf32, #tpu.memory_space<vmem>>, %arg4: memref<4x128xf32, #tpu.memory_space<vmem>>, %arg5: memref<1x128xf32, #tpu.memory_space<vmem>>, %arg6: memref<128x128xf32, #tpu.memory_space<vmem>>, %arg7: memref<128x128xf32, #tpu.memory_space<vmem>>) attributes {dimension_semantics = [#tpu.dimension_semantics<parallel>, #tpu.dimension_semantics<arbitrary>], iteration_bounds = array<i64: 1, 1>, scalar_prefetch = 0 : i64, scratch_operands = 1 : i64, tpu.core_type = #tpu.core_type<tc>, window_params = [{transform_indices = @transform_0, window_bounds = array<i64: 128, 128>}, {transform_indices = @transform_1, window_bounds = array<i64: 128, 4>}, {pipeline_mode = #tpu.pipeline_mode<synchronous>, transform_indices = @transform_2, window_bounds = array<i64: 4, 128>}, {pipeline_mode = #tpu.pipeline_mode<synchronous>, transform_indices = @transform_3, window_bounds = array<i64: 1, 128>}, {transform_indices = @transform_4, window_bounds = array<i64: 128, 128>}]} {
    %c0_i32 = arith.constant 0 : i32
    %0 = arith.cmpi eq, %arg1, %c0_i32 : i32
    %1 = arith.extui %0 : i1 to i32
    %c0_i32_0 = arith.constant 0 : i32
    %2 = arith.cmpi ne, %1, %c0_i32_0 : i32
    scf.if %2 {
      %cst_13 = arith.constant 0.000000e+00 : f32
      %14 = vector.broadcast %cst_13 : f32 to vector<128x128xf32>
      %c0_14 = arith.constant 0 : index
      %c0_15 = arith.constant 0 : index
      %15 = vector.load %arg7[%c0_14, %c0_15] : memref<128x128xf32, #tpu.memory_space<vmem>>, vector<128x128xf32>
      tpu.vector_store %arg7[%c0_14, %c0_15], %14 {strides = array<i32>} : memref<128x128xf32, #tpu.memory_space<vmem>>, vector<128x128xf32>,
    } else {
    }
    %c0 = arith.constant 0 : index
    %c0_1 = arith.constant 0 : index
    %3 = vector.load %arg3[%c0, %c0_1] : memref<128x4xf32, #tpu.memory_space<vmem>>, vector<128x4xf32>
    %c0_2 = arith.constant 0 : index
    %c0_3 = arith.constant 0 : index
    %4 = vector.load %arg4[%c0_2, %c0_3] : memref<4x128xf32, #tpu.memory_space<vmem>>, vector<4x128xf32>
    %cst = arith.constant dense<0.000000e+00> : vector<128x128xf32>
    %5 = tpu.matmul %3, %4, %cst {dimension_numbers = #tpu.dot_dimension_numbers<[1], [0], [0], [1], [0, 0, 1, 1], [], []>} : vector<128x4xf32>, vector<4x128xf32>, vector<128x128xf32> -> vector<128x128xf32>
    %c0_4 = arith.constant 0 : index
    %c0_5 = arith.constant 0 : index
    %6 = vector.load %arg7[%c0_4, %c0_5] : memref<128x128xf32, #tpu.memory_space<vmem>>, vector<128x128xf32>
    %c0_6 = arith.constant 0 : index
    %c0_7 = arith.constant 0 : index
    %7 = vector.load %arg2[%c0_6, %c0_7] : memref<128x128xf32, #tpu.memory_space<vmem>>, vector<128x128xf32>
    %cst_8 = arith.constant dense<0.000000e+00> : vector<128x128xf32>
    %8 = tpu.matmul %7, %5, %cst_8 {dimension_numbers = #tpu.dot_dimension_numbers<[1], [0], [0], [1], [0, 0, 1, 1], [], []>} : vector<128x128xf32>, vector<128x128xf32>, vector<128x128xf32> -> vector<128x128xf32>
    %9 = arith.addf %6, %8 : vector<128x128xf32>
    %c0_9 = arith.constant 0 : index
    %c0_10 = arith.constant 0 : index
    %10 = vector.load %arg7[%c0_9, %c0_10] : memref<128x128xf32, #tpu.memory_space<vmem>>, vector<128x128xf32>
    tpu.vector_store %arg7[%c0_9, %c0_10], %9 {strides = array<i32>} : memref<128x128xf32, #tpu.memory_space<vmem>>, vector<128x128xf32>,
    %c0_i32_11 = arith.constant 0 : i32
    %11 = arith.cmpi eq, %arg1, %c0_i32_11 : i32
    %12 = arith.extui %11 : i1 to i32
    %c0_i32_12 = arith.constant 0 : i32
    %13 = arith.cmpi ne, %12, %c0_i32_12 : i32
    scf.if %13 {
      %c0_13 = arith.constant 0 : index
      %c0_14 = arith.constant 0 : index
      %14 = vector.load %arg7[%c0_13, %c0_14] : memref<128x128xf32, #tpu.memory_space<vmem>>, vector<128x128xf32>
      %c0_15 = arith.constant 0 : index
      %c0_16 = arith.constant 0 : index
      %15 = vector.load %arg5[%c0_15, %c0_16] : memref<1x128xf32, #tpu.memory_space<vmem>>, vector<1x128xf32>
      %16 = vector.broadcast %15 : vector<1x128xf32> to vector<128x128xf32>
      %17 = arith.addf %14, %16 : vector<128x128xf32>
      %cst_17 = arith.constant 0.000000e+00 : f32
      %18 = vector.broadcast %cst_17 : f32 to vector<128x128xf32>
      %19 = arith.maximumf %17, %18 : vector<128x128xf32>
      %c0_18 = arith.constant 0 : index
      %c0_19 = arith.constant 0 : index
      %20 = vector.load %arg6[%c0_18, %c0_19] : memref<128x128xf32, #tpu.memory_space<vmem>>, vector<128x128xf32>
      tpu.vector_store %arg6[%c0_18, %c0_19], %19 {strides = array<i32>} : memref<128x128xf32, #tpu.memory_space<vmem>>, vector<128x128xf32>,
    } else {
    }
    return
  }
  func.func @transform_0(%arg0: i32, %arg1: i32) -> (i32, i32) {
    %c0_i32 = arith.constant 0 : i32
    return %arg0, %arg1 : i32, i32
  }
  func.func @transform_1(%arg0: i32, %arg1: i32) -> (i32, i32) {
    %c0_i32 = arith.constant 0 : i32
    %c0_i32_0 = arith.constant 0 : i32
    return %arg1, %c0_i32 : i32, i32
  }
  func.func @transform_2(%arg0: i32, %arg1: i32) -> (i32, i32) {
    %c0_i32 = arith.constant 0 : i32
    %c0_i32_0 = arith.constant 0 : i32
    %c0_i32_1 = arith.constant 0 : i32
    return %c0_i32, %c0_i32_0 : i32, i32
  }
  func.func @transform_3(%arg0: i32, %arg1: i32) -> (i32, i32) {
    %c0_i32 = arith.constant 0 : i32
    %c0_i32_0 = arith.constant 0 : i32
    %c0_i32_1 = arith.constant 0 : i32
    return %c0_i32, %c0_i32_0 : i32, i32
  }
  func.func @transform_4(%arg0: i32, %arg1: i32) -> (i32, i32) {
    %c0_i32 = arith.constant 0 : i32
    %c0_i32_0 = arith.constant 0 : i32
    return %arg0, %c0_i32 : i32, i32
  }
}

module attributes {stable_mosaic.version = 11 : i64} {
  func.func @_gcn_layer_kernel(%arg0: i32, %arg1: i32, %arg2: memref<128x128xf32, #tpu.memory_space<vmem>>, %arg3: memref<128x128xf32, #tpu.memory_space<vmem>>, %arg4: memref<128x128xf32, #tpu.memory_space<vmem>>, %arg5: memref<1x128xf32, #tpu.memory_space<vmem>>, %arg6: memref<128x128xf32, #tpu.memory_space<vmem>>, %arg7: memref<128x128xf32, #tpu.memory_space<vmem>>) attributes {dimension_semantics = [#tpu.dimension_semantics<parallel>, #tpu.dimension_semantics<arbitrary>], iteration_bounds = array<i64: 1, 1>, scalar_prefetch = 0 : i64, scratch_operands = 1 : i64, tpu.core_type = #tpu.core_type<tc>, window_params = [{transform_indices = @transform_0, window_bounds = array<i64: 128, 128>}, {transform_indices = @transform_1, window_bounds = array<i64: 128, 128>}, {pipeline_mode = #tpu.pipeline_mode<synchronous>, transform_indices = @transform_2, window_bounds = array<i64: 128, 128>}, {pipeline_mode = #tpu.pipeline_mode<synchronous>, transform_indices = @transform_3, window_bounds = array<i64: 1, 128>}, {transform_indices = @transform_4, window_bounds = array<i64: 128, 128>}]} {
    %c0_i32 = arith.constant 0 : i32
    %0 = arith.cmpi eq, %arg1, %c0_i32 : i32
    %1 = arith.extui %0 : i1 to i32
    %c0_i32_0 = arith.constant 0 : i32
    %2 = arith.cmpi ne, %1, %c0_i32_0 : i32
    scf.if %2 {
      %cst_13 = arith.constant 0.000000e+00 : f32
      %14 = vector.broadcast %cst_13 : f32 to vector<128x128xf32>
      %c0_14 = arith.constant 0 : index
      %c0_15 = arith.constant 0 : index
      %15 = vector.load %arg7[%c0_14, %c0_15] : memref<128x128xf32, #tpu.memory_space<vmem>>, vector<128x128xf32>
      tpu.vector_store %arg7[%c0_14, %c0_15], %14 {strides = array<i32>} : memref<128x128xf32, #tpu.memory_space<vmem>>, vector<128x128xf32>,
    } else {
    }
    %c0 = arith.constant 0 : index
    %c0_1 = arith.constant 0 : index
    %3 = vector.load %arg3[%c0, %c0_1] : memref<128x128xf32, #tpu.memory_space<vmem>>, vector<128x128xf32>
    %c0_2 = arith.constant 0 : index
    %c0_3 = arith.constant 0 : index
    %4 = vector.load %arg4[%c0_2, %c0_3] : memref<128x128xf32, #tpu.memory_space<vmem>>, vector<128x128xf32>
    %cst = arith.constant dense<0.000000e+00> : vector<128x128xf32>
    %5 = tpu.matmul %3, %4, %cst {dimension_numbers = #tpu.dot_dimension_numbers<[1], [0], [0], [1], [0, 0, 1, 1], [], []>} : vector<128x128xf32>, vector<128x128xf32>, vector<128x128xf32> -> vector<128x128xf32>
    %c0_4 = arith.constant 0 : index
    %c0_5 = arith.constant 0 : index
    %6 = vector.load %arg7[%c0_4, %c0_5] : memref<128x128xf32, #tpu.memory_space<vmem>>, vector<128x128xf32>
    %c0_6 = arith.constant 0 : index
    %c0_7 = arith.constant 0 : index
    %7 = vector.load %arg2[%c0_6, %c0_7] : memref<128x128xf32, #tpu.memory_space<vmem>>, vector<128x128xf32>
    %cst_8 = arith.constant dense<0.000000e+00> : vector<128x128xf32>
    %8 = tpu.matmul %7, %5, %cst_8 {dimension_numbers = #tpu.dot_dimension_numbers<[1], [0], [0], [1], [0, 0, 1, 1], [], []>} : vector<128x128xf32>, vector<128x128xf32>, vector<128x128xf32> -> vector<128x128xf32>
    %9 = arith.addf %6, %8 : vector<128x128xf32>
    %c0_9 = arith.constant 0 : index
    %c0_10 = arith.constant 0 : index
    %10 = vector.load %arg7[%c0_9, %c0_10] : memref<128x128xf32, #tpu.memory_space<vmem>>, vector<128x128xf32>
    tpu.vector_store %arg7[%c0_9, %c0_10], %9 {strides = array<i32>} : memref<128x128xf32, #tpu.memory_space<vmem>>, vector<128x128xf32>,
    %c0_i32_11 = arith.constant 0 : i32
    %11 = arith.cmpi eq, %arg1, %c0_i32_11 : i32
    %12 = arith.extui %11 : i1 to i32
    %c0_i32_12 = arith.constant 0 : i32
    %13 = arith.cmpi ne, %12, %c0_i32_12 : i32
    scf.if %13 {
      %c0_13 = arith.constant 0 : index
      %c0_14 = arith.constant 0 : index
      %14 = vector.load %arg7[%c0_13, %c0_14] : memref<128x128xf32, #tpu.memory_space<vmem>>, vector<128x128xf32>
      %c0_15 = arith.constant 0 : index
      %c0_16 = arith.constant 0 : index
      %15 = vector.load %arg5[%c0_15, %c0_16] : memref<1x128xf32, #tpu.memory_space<vmem>>, vector<1x128xf32>
      %16 = vector.broadcast %15 : vector<1x128xf32> to vector<128x128xf32>
      %17 = arith.addf %14, %16 : vector<128x128xf32>
      %c0_17 = arith.constant 0 : index
      %c0_18 = arith.constant 0 : index
      %18 = vector.load %arg6[%c0_17, %c0_18] : memref<128x128xf32, #tpu.memory_space<vmem>>, vector<128x128xf32>
      tpu.vector_store %arg6[%c0_17, %c0_18], %17 {strides = array<i32>} : memref<128x128xf32, #tpu.memory_space<vmem>>, vector<128x128xf32>,
    } else {
    }
    return
  }
  func.func @transform_0(%arg0: i32, %arg1: i32) -> (i32, i32) {
    %c0_i32 = arith.constant 0 : i32
    return %arg0, %arg1 : i32, i32
  }
  func.func @transform_1(%arg0: i32, %arg1: i32) -> (i32, i32) {
    %c0_i32 = arith.constant 0 : i32
    %c0_i32_0 = arith.constant 0 : i32
    return %arg1, %c0_i32 : i32, i32
  }
  func.func @transform_2(%arg0: i32, %arg1: i32) -> (i32, i32) {
    %c0_i32 = arith.constant 0 : i32
    %c0_i32_0 = arith.constant 0 : i32
    %c0_i32_1 = arith.constant 0 : i32
    return %c0_i32, %c0_i32_0 : i32, i32
  }
  func.func @transform_3(%arg0: i32, %arg1: i32) -> (i32, i32) {
    %c0_i32 = arith.constant 0 : i32
    %c0_i32_0 = arith.constant 0 : i32
    %c0_i32_1 = arith.constant 0 : i32
    return %c0_i32, %c0_i32_0 : i32, i32
  }
  func.func @transform_4(%arg0: i32, %arg1: i32) -> (i32, i32) {
    %c0_i32 = arith.constant 0 : i32
    %c0_i32_0 = arith.constant 0 : i32
    return %arg0, %c0_i32 : i32, i32
  }
}

</mosaic_0001>

<bundles_post_ra>
// kernel: gcn_forward.2
= control target key start
LH: loop header
LB: loop body
LE: loop exit
PB: predicated region body
PF: predicated region fallthrough
CT: control target
= control target key end

     0   :  { %vm103_vm0 = vcmask 1043456   ;;  %vm54_vm1 = vcmask 31744   ;;  %s641_s2 = inlined_call_operand.vmem [shape: f32[4,128], index: 2, kind: input, shape index: {}]   ;;  %s642_s1 = inlined_call_operand.vmem [shape: f32[128,4], index: 1, kind: input, shape index: {}]   ;;  %s643_s3 = inlined_call_operand.vmem [shape: f32[1,128], index: 3, kind: input, shape index: {}]   ;;  %s644_s0 = inlined_call_operand.vmem [shape: f32[128,128], index: 0, kind: input, shape index: {}]   ;;  %s645_s4 = inlined_call_operand.vmem [shape: f32[128,128], index: 4, kind: output, shape index: {}]  }
   0x1   :  { %v53_v0 = vld [vmem:[%s641_s2] sm:$0xf]  ;;  %v47_v2 = vld [vmem:[%s642_s1 + $0x50] sm:$0xff]  ;;  %v38_v3 = vld [vmem:[%s642_s1 + $0x8] sm:$0xff] }
   0x2   :  { %v37_v1 = vld [vmem:[%s642_s1] sm:$0xff]  ;;  %376 = vmatpush.msk.msra.mxu0 %vm103_vm0, %v53_v0  ;;  %393 = vmatpush.msk.msra.mxu3 %vm103_vm0, %v53_v0  ;;  %v48_v4 = vld [vmem:[%s642_s1 + $0x58] sm:$0xff]  ;;  %v39_v5 = vld [vmem:[%s642_s1 + $0x10] sm:$0xff] }
   0x3   :  { %377 = vmatmul.msk.f32.vlgmr.msra.gmra.mxu0 %vm54_vm1, %v37_v1  ;;  %387 = vmatmul.msk.f32.vlgmr.msra.gmra.mxu3 %vm54_vm1, %v47_v2  ;;  %v49_v6 = vld [vmem:[%s642_s1 + $0x60] sm:$0xff]  ;;  %v40_v7 = vld [vmem:[%s642_s1 + $0x18] sm:$0xff]  ;;  %v50_v8 = vld [vmem:[%s642_s1 + $0x68] sm:$0xff] }
   0x4   :  { %v41_v9 = vld [vmem:[%s642_s1 + $0x20] sm:$0xff]  ;;  %v51_v10 = vld [vmem:[%s642_s1 + $0x70] sm:$0xff]  ;;  %v42_v11 = vld [vmem:[%s642_s1 + $0x28] sm:$0xff] }
   0x5   :  { %v52_v12 = vld [vmem:[%s642_s1 + $0x78] sm:$0xff]  ;;  %v43_v13 = vld [vmem:[%s642_s1 + $0x30] sm:$0xff]  ;;  %v45_v15 = vld [vmem:[%s642_s1 + $0x40] sm:$0xff] }
   0x6   :  { %v44_v14 = vld [vmem:[%s642_s1 + $0x38] sm:$0xff]  ;;  %v46_v16 = vld [vmem:[%s642_s1 + $0x48] sm:$0xff]  ;;  %v194_v33 = vld [vmem:[%s644_s0 + $0x30] sm:$0xff] }
   0x7   :  { %v188_v34 = vld [vmem:[%s644_s0] sm:$0xff]  ;;  %v201_v35 = vld [vmem:[%s644_s0 + $0x68] sm:$0xff]  ;;  %v195_v36 = vld [vmem:[%s644_s0 + $0x38] sm:$0xff] }
   0x8   :  { %v189_v37 = vld [vmem:[%s644_s0 + $0x8] sm:$0xff]  ;;  %v202_v38 = vld [vmem:[%s644_s0 + $0x70] sm:$0xff]  ;;  %v196_v39 = vld [vmem:[%s644_s0 + $0x40] sm:$0xff] }
   0x9   :  { %v190_v40 = vld [vmem:[%s644_s0 + $0x10] sm:$0xff]  ;;  %v203_v41 = vld [vmem:[%s644_s0 + $0x78] sm:$0xff]  ;;  %v197_v42 = vld [vmem:[%s644_s0 + $0x48] sm:$0xff] }
   0xa   :  { %v191_v43 = vld [vmem:[%s644_s0 + $0x18] sm:$0xff]  ;;  %v198_v44 = vld [vmem:[%s644_s0 + $0x50] sm:$0xff]  ;;  %v192_v45 = vld [vmem:[%s644_s0 + $0x20] sm:$0xff] }
   0xb   :  { %378 = vmatmul.msk.f32.gmra.mxu0 %vm54_vm1, %v38_v3  ;;  %388 = vmatmul.msk.f32.gmra.mxu3 %vm54_vm1, %v48_v4  ;;  %v199_v46 = vld [vmem:[%s644_s0 + $0x58] sm:$0xff]  ;;  %v193_v47 = vld [vmem:[%s644_s0 + $0x28] sm:$0xff]  ;;  %v200_v48 = vld [vmem:[%s644_s0 + $0x60] sm:$0xff] }
   0xc   :  { %v575_v49 = vld [vmem:[%s643_s3] ss:$0 sm:$0xff] }
  0x13   :  { %379 = vmatmul.msk.f32.gmra.mxu0 %vm54_vm1, %v39_v5  ;;  %389 = vmatmul.msk.f32.gmra.mxu3 %vm54_vm1, %v49_v6 }
  0x1b   :  { %380 = vmatmul.msk.f32.gmra.mxu0 %vm54_vm1, %v40_v7  ;;  %390 = vmatmul.msk.f32.gmra.mxu3 %vm54_vm1, %v50_v8 }
  0x23   :  { %381 = vmatmul.msk.f32.gmra.mxu0 %vm54_vm1, %v41_v9  ;;  %391 = vmatmul.msk.f32.gmra.mxu3 %vm54_vm1, %v51_v10 }
  0x2b   :  { %382 = vmatmul.msk.f32.gmra.mxu0 %vm54_vm1, %v42_v11  ;;  %392 = vmatmul.msk.f32.gmra.mxu3 %vm54_vm1, %v52_v12 }
  0x33   :  { %383 = vmatmul.msk.f32.gmra.mxu0 %vm54_vm1, %v43_v13 }
  0x3b   :  { %384 = vmatmul.msk.f32.gmra.mxu0 %vm54_vm1, %v44_v14 }
  0x43   :  { %385 = vmatmul.msk.f32.gmra.mxu0 %vm54_vm1, %v45_v15 }
  0x4b   :  { %386 = vmatmul.msk.f32.gmra.mxu0 %vm54_vm1, %v46_v16 }
  0x80   :  { %v519_v17 = vpop.f32.mrf.mxu0 }
  0x86   :  { %v154_v18 = vpop.f32.mrf.mxu3 }
  0x88   :  { %v127_v19 = vpop.f32.mrf.mxu0 }
  0x8e   :  { %v157_v20 = vpop.f32.mrf.mxu3 }
  0x90   :  { %v130_v21 = vpop.f32.mrf.mxu0 }
  0x96   :  { %v160_v22 = vpop.f32.mrf.mxu3 }
  0x98   :  { %v133_v23 = vpop.f32.mrf.mxu0 }
  0x9e   :  { %v163_v24 = vpop.f32.mrf.mxu3 }
  0xa0   :  { %v136_v25 = vpop.f32.mrf.mxu0 }
  0xa6   :  { %v166_v26 = vpop.f32.mrf.mxu3 }
  0xa8   :  { %v139_v27 = vpop.f32.mrf.mxu0 }
  0xae   :  { %v169_v28 = vpop.f32.mrf.mxu3 }
  0xaf   :  { %204 = vmatpush.msra.mxu1 %v169_v28  ;;  %394 = vmatpush.msra.mxu2 %v169_v28 }
  0xb0   :  { %395 = vmatpush.msrb.mxu3 %v169_v28  ;;  %v142_v29 = vpop.f32.mrf.mxu0 }
  0xb1   :  { %205 = vmatpush.msra.mxu1 %v166_v26  ;;  %396 = vmatpush.msra.mxu2 %v166_v26 }
  0xb2   :  { %397 = vmatpush.msrb.mxu3 %v166_v26 }
  0xb3   :  { %206 = vmatpush.msra.mxu1 %v163_v24  ;;  %398 = vmatpush.msra.mxu2 %v163_v24 }
  0xb4   :  { %399 = vmatpush.msrb.mxu3 %v163_v24 }
  0xb5   :  { %207 = vmatpush.msra.mxu1 %v160_v22  ;;  %400 = vmatpush.msra.mxu2 %v160_v22 }
  0xb6   :  { %401 = vmatpush.msrb.mxu3 %v160_v22 }
  0xb7   :  { %208 = vmatpush.msra.mxu1 %v157_v20  ;;  %402 = vmatpush.msra.mxu2 %v157_v20 }
  0xb8   :  { %403 = vmatpush.msrb.mxu3 %v157_v20  ;;  %v145_v30 = vpop.f32.mrf.mxu0 }
  0xb9   :  { %209 = vmatpush.msra.mxu1 %v154_v18  ;;  %404 = vmatpush.msra.mxu2 %v154_v18 }
  0xba   :  { %405 = vmatpush.msrb.mxu3 %v154_v18 }
  0xc0   :  { %v148_v31 = vpop.f32.mrf.mxu0 }
  0xc8   :  { %v151_v32 = vpop.f32.mrf.mxu0 }
  0xc9   :  { %210 = vmatpush.msra.mxu1 %v151_v32  ;;  %406 = vmatpush.msra.mxu2 %v151_v32 }
  0xca   :  { %407 = vmatpush.msrb.mxu3 %v151_v32 }
  0xcb   :  { %211 = vmatpush.msra.mxu1 %v148_v31  ;;  %408 = vmatpush.msra.mxu2 %v148_v31 }
  0xcc   :  { %409 = vmatpush.msrb.mxu3 %v148_v31 }
  0xcd   :  { %212 = vmatpush.msra.mxu1 %v145_v30  ;;  %410 = vmatpush.msra.mxu2 %v145_v30 }
  0xce   :  { %411 = vmatpush.msrb.mxu3 %v145_v30 }
  0xcf   :  { %213 = vmatpush.msra.mxu1 %v142_v29  ;;  %412 = vmatpush.msra.mxu2 %v142_v29 }
  0xd0   :  { %413 = vmatpush.msrb.mxu3 %v142_v29 }
  0xd1   :  { %214 = vmatpush.msra.mxu1 %v139_v27  ;;  %414 = vmatpush.msra.mxu2 %v139_v27 }
  0xd2   :  { %415 = vmatpush.msrb.mxu3 %v139_v27 }
  0xd3   :  { %215 = vmatpush.msra.mxu1 %v136_v25  ;;  %416 = vmatpush.msra.mxu2 %v136_v25 }
  0xd4   :  { %417 = vmatpush.msrb.mxu3 %v136_v25 }
  0xd5   :  { %216 = vmatpush.msra.mxu1 %v133_v23  ;;  %418 = vmatpush.msra.mxu2 %v133_v23 }
  0xd6   :  { %419 = vmatpush.msrb.mxu3 %v133_v23 }
  0xd7   :  { %217 = vmatpush.msra.mxu1 %v130_v21  ;;  %420 = vmatpush.msra.mxu2 %v130_v21 }
  0xd8   :  { %421 = vmatpush.msrb.mxu3 %v130_v21 }
  0xd9   :  { %218 = vmatpush.msra.mxu1 %v127_v19  ;;  %422 = vmatpush.msra.mxu2 %v127_v19 }
  0xda   :  { %423 = vmatpush.msrb.mxu3 %v127_v19 }
  0xdb   :  { %219 = vmatpush.msra.mxu1 %v519_v17  ;;  %424 = vmatpush.msra.mxu2 %v519_v17 }
  0xdc   :  { %425 = vmatpush.msrb.mxu3 %v519_v17  ;;  %238 = vmatmul.f32.vlgmr.msra.gmra.mxu2 %v194_v33 }
  0xdd   :  { %220 = vmatmul.f32.vlgmr.msra.gmra.mxu1 %v188_v34  ;;  %259 = vmatmul.f32.vlgmr.msrb.gmra.mxu3 %v201_v35 }
  0xe4   :  { %241 = vmatmul.f32.gmra.mxu2 %v195_v36 }
  0xe5   :  { %223 = vmatmul.f32.gmra.mxu1 %v189_v37  ;;  %262 = vmatmul.f32.gmra.mxu3 %v202_v38 }
  0xec   :  { %244 = vmatmul.f32.gmra.mxu2 %v196_v39 }
  0xed   :  { %226 = vmatmul.f32.gmra.mxu1 %v190_v40  ;;  %265 = vmatmul.f32.gmra.mxu3 %v203_v41 }
  0xf4   :  { %247 = vmatmul.f32.gmra.mxu2 %v197_v42 }
  0xf5   :  { %229 = vmatmul.f32.gmra.mxu1 %v191_v43 }
  0xfc   :  { %250 = vmatmul.f32.gmra.mxu2 %v198_v44 }
  0xfd   :  { %232 = vmatmul.f32.gmra.mxu1 %v192_v45 }
 0x104   :  { %253 = vmatmul.f32.gmra.mxu2 %v199_v46 }
 0x105   :  { %235 = vmatmul.f32.gmra.mxu1 %v193_v47 }
 0x10c   :  { %256 = vmatmul.f32.gmra.mxu2 %v200_v48 }
 0x15a   :  { %v221_v50 = vpop.f32.mrf.mxu1 }
 0x15b   :  { %v324_v51 = vadd.f32 %v575_v49, %v221_v50 }
 0x15d   :  { %v340_v52 = vmax.f32 %v324_v51, 0.0 }
 0x15f   :  { %v239_v53 = vpop.f32.mrf.mxu2  ;;  %356 = vst [vmem:[%s645_s4] sm:$0xff] %v340_v52 }
 0x160   :  { %v330_v54 = vadd.f32 %v575_v49, %v239_v53  ;;  %v260_v55 = vpop.f32.mrf.mxu3 }
 0x161   :  { %v337_v56 = vadd.f32 %v575_v49, %v260_v55 }
 0x162   :  { %v346_v57 = vmax.f32 %v330_v54, 0.0  ;;  %v224_v58 = vpop.f32.mrf.mxu1 }
 0x163   :  { %v325_v59 = vadd.f32 %v575_v49, %v224_v58  ;;  %v353_v60 = vmax.f32 %v337_v56, 0.0 }
 0x164   :  { %362 = vst [vmem:[%s645_s4 + $0x30] sm:$0xff] %v346_v57 }
 0x165   :  { %v341_v61 = vmax.f32 %v325_v59, 0.0  ;;  %369 = vst [vmem:[%s645_s4 + $0x68] sm:$0xff] %v353_v60 }
 0x167   :  { %v242_v62 = vpop.f32.mrf.mxu2  ;;  %357 = vst [vmem:[%s645_s4 + $0x8] sm:$0xff] %v341_v61 }
 0x168   :  { %v331_v63 = vadd.f32 %v575_v49, %v242_v62  ;;  %v263_v0 = vpop.f32.mrf.mxu3 }
 0x169   :  { %v338_v1 = vadd.f32 %v575_v49, %v263_v0 }
 0x16a   :  { %v347_v2 = vmax.f32 %v331_v63, 0.0  ;;  %v227_v3 = vpop.f32.mrf.mxu1 }
 0x16b   :  { %v326_v4 = vadd.f32 %v575_v49, %v227_v3  ;;  %v354_v5 = vmax.f32 %v338_v1, 0.0 }
 0x16c   :  { %363 = vst [vmem:[%s645_s4 + $0x38] sm:$0xff] %v347_v2 }
 0x16d   :  { %v342_v6 = vmax.f32 %v326_v4, 0.0  ;;  %370 = vst [vmem:[%s645_s4 + $0x70] sm:$0xff] %v354_v5 }
 0x16f   :  { %v245_v7 = vpop.f32.mrf.mxu2  ;;  %358 = vst [vmem:[%s645_s4 + $0x10] sm:$0xff] %v342_v6 }
 0x170   :  { %v332_v8 = vadd.f32 %v575_v49, %v245_v7  ;;  %v266_v9 = vpop.f32.mrf.mxu3 }
 0x171   :  { %v339_v10 = vadd.f32 %v575_v49, %v266_v9 }
 0x172   :  { %v348_v11 = vmax.f32 %v332_v8, 0.0  ;;  %v230_v12 = vpop.f32.mrf.mxu1 }
 0x173   :  { %v327_v13 = vadd.f32 %v575_v49, %v230_v12  ;;  %v355_v14 = vmax.f32 %v339_v10, 0.0 }
 0x174   :  { %364 = vst [vmem:[%s645_s4 + $0x40] sm:$0xff] %v348_v11 }
 0x175   :  { %v343_v15 = vmax.f32 %v327_v13, 0.0  ;;  %371 = vst [vmem:[%s645_s4 + $0x78] sm:$0xff] %v355_v14 }
 0x177   :  { %v248_v16 = vpop.f32.mrf.mxu2  ;;  %359 = vst [vmem:[%s645_s4 + $0x18] sm:$0xff] %v343_v15 }
 0x178   :  { %v333_v17 = vadd.f32 %v575_v49, %v248_v16 }
 0x17a   :  { %v349_v18 = vmax.f32 %v333_v17, 0.0  ;;  %v233_v19 = vpop.f32.mrf.mxu1 }
 0x17b   :  { %v328_v20 = vadd.f32 %v575_v49, %v233_v19 }
 0x17c   :  { %365 = vst [vmem:[%s645_s4 + $0x48] sm:$0xff] %v349_v18 }
 0x17d   :  { %v344_v21 = vmax.f32 %v328_v20, 0.0 }
 0x17f   :  { %v251_v22 = vpop.f32.mrf.mxu2  ;;  %360 = vst [vmem:[%s645_s4 + $0x20] sm:$0xff] %v344_v21 }
 0x180   :  { %v334_v23 = vadd.f32 %v575_v49, %v251_v22 }
 0x182   :  { %v350_v24 = vmax.f32 %v334_v23, 0.0  ;;  %v236_v25 = vpop.f32.mrf.mxu1 }
 0x183   :  { %v329_v26 = vadd.f32 %v575_v49, %v236_v25 }
 0x184   :  { %366 = vst [vmem:[%s645_s4 + $0x50] sm:$0xff] %v350_v24 }
 0x185   :  { %v345_v27 = vmax.f32 %v329_v26, 0.0 }
 0x187   :  { %v254_v28 = vpop.f32.mrf.mxu2  ;;  %361 = vst [vmem:[%s645_s4 + $0x28] sm:$0xff] %v345_v27 }
 0x188   :  { %v335_v29 = vadd.f32 %v575_v49, %v254_v28 }
 0x18a   :  { %v351_v30 = vmax.f32 %v335_v29, 0.0 }
 0x18c   :  { %367 = vst [vmem:[%s645_s4 + $0x58] sm:$0xff] %v351_v30 }
 0x18f   :  { %v257_v31 = vpop.f32.mrf.mxu2 }
 0x190   :  { %v336_v32 = vadd.f32 %v575_v49, %v257_v31 }
 0x192   :  { %v352_v33 = vmax.f32 %v336_v32, 0.0 }
 0x194   :  { %368 = vst [vmem:[%s645_s4 + $0x60] sm:$0xff] %v352_v33 }

// kernel: gcn_forward.3
= control target key start
LH: loop header
LB: loop body
LE: loop exit
PB: predicated region body
PF: predicated region fallthrough
CT: control target
= control target key end

     0   :  { %s575_s2 = inlined_call_operand.vmem [shape: f32[128,128], index: 2, kind: input, shape index: {}]   ;;  %s576_s1 = inlined_call_operand.vmem [shape: f32[128,128], index: 1, kind: input, shape index: {}]   ;;  %s577_s3 = inlined_call_operand.vmem [shape: f32[1,128], index: 3, kind: input, shape index: {}]   ;;  %s578_s0 = inlined_call_operand.vmem [shape: f32[128,128], index: 0, kind: input, shape index: {}]   ;;  %s579_s4 = inlined_call_operand.vmem [shape: f32[128,128], index: 4, kind: output, shape index: {}]  }
   0x1   :  { %v68_v0 = vld [vmem:[%s575_s2 + $0x78] sm:$0xff]  ;;  %v67_v1 = vld [vmem:[%s575_s2 + $0x70] sm:$0xff]  ;;  %v66_v2 = vld [vmem:[%s575_s2 + $0x68] sm:$0xff] }
   0x2   :  { %322 = vmatpush.msra.mxu2 %v68_v0  ;;  %69 = vmatpush.msra.mxu0 %v68_v0  ;;  %v65_v3 = vld [vmem:[%s575_s2 + $0x60] sm:$0xff]  ;;  %v64_v4 = vld [vmem:[%s575_s2 + $0x58] sm:$0xff]  ;;  %v63_v5 = vld [vmem:[%s575_s2 + $0x50] sm:$0xff] }
   0x3   :  { %v62_v6 = vld [vmem:[%s575_s2 + $0x48] sm:$0xff]  ;;  %v61_v7 = vld [vmem:[%s575_s2 + $0x40] sm:$0xff]  ;;  %v60_v8 = vld [vmem:[%s575_s2 + $0x38] sm:$0xff] }
   0x4   :  { %323 = vmatpush.msra.mxu2 %v67_v1  ;;  %70 = vmatpush.msra.mxu0 %v67_v1  ;;  %v59_v9 = vld [vmem:[%s575_s2 + $0x30] sm:$0xff]  ;;  %v58_v10 = vld [vmem:[%s575_s2 + $0x28] sm:$0xff]  ;;  %v57_v11 = vld [vmem:[%s575_s2 + $0x20] sm:$0xff] }
   0x5   :  { %v56_v12 = vld [vmem:[%s575_s2 + $0x18] sm:$0xff]  ;;  %v55_v13 = vld [vmem:[%s575_s2 + $0x10] sm:$0xff]  ;;  %v54_v14 = vld [vmem:[%s575_s2 + $0x8] sm:$0xff] }
   0x6   :  { %324 = vmatpush.msra.mxu2 %v66_v2  ;;  %71 = vmatpush.msra.mxu0 %v66_v2  ;;  %v53_v15 = vld [vmem:[%s575_s2] sm:$0xff]  ;;  %v46_v18 = vld [vmem:[%s576_s1 + $0x48] sm:$0xff]  ;;  %v47_v20 = vld [vmem:[%s576_s1 + $0x50] sm:$0xff] }
   0x7   :  { %v45_v16 = vld [vmem:[%s576_s1 + $0x40] sm:$0xff]  ;;  %v38_v19 = vld [vmem:[%s576_s1 + $0x8] sm:$0xff]  ;;  %v39_v21 = vld [vmem:[%s576_s1 + $0x10] sm:$0xff] }
   0x8   :  { %325 = vmatpush.msra.mxu2 %v65_v3  ;;  %72 = vmatpush.msra.mxu0 %v65_v3  ;;  %v37_v17 = vld [vmem:[%s576_s1] sm:$0xff]  ;;  %v48_v22 = vld [vmem:[%s576_s1 + $0x58] sm:$0xff]  ;;  %v50_v26 = vld [vmem:[%s576_s1 + $0x68] sm:$0xff] }
   0x9   :  { %v40_v23 = vld [vmem:[%s576_s1 + $0x18] sm:$0xff]  ;;  %v49_v24 = vld [vmem:[%s576_s1 + $0x60] sm:$0xff]  ;;  %v42_v27 = vld [vmem:[%s576_s1 + $0x28] sm:$0xff] }
   0xa   :  { %326 = vmatpush.msra.mxu2 %v64_v4  ;;  %73 = vmatpush.msra.mxu0 %v64_v4  ;;  %v41_v25 = vld [vmem:[%s576_s1 + $0x20] sm:$0xff]  ;;  %v51_v28 = vld [vmem:[%s576_s1 + $0x70] sm:$0xff]  ;;  %v52_v30 = vld [vmem:[%s576_s1 + $0x78] sm:$0xff] }
   0xb   :  { %v43_v29 = vld [vmem:[%s576_s1 + $0x30] sm:$0xff]  ;;  %v44_v31 = vld [vmem:[%s576_s1 + $0x38] sm:$0xff]  ;;  %v158_v48 = vld [vmem:[%s578_s0 + $0x40] sm:$0xff] }
   0xc   :  { %327 = vmatpush.msra.mxu2 %v63_v5  ;;  %74 = vmatpush.msra.mxu0 %v63_v5  ;;  %v150_v49 = vld [vmem:[%s578_s0] sm:$0xff]  ;;  %v159_v50 = vld [vmem:[%s578_s0 + $0x48] sm:$0xff]  ;;  %v160_v52 = vld [vmem:[%s578_s0 + $0x50] sm:$0xff] }
   0xd   :  { %v151_v51 = vld [vmem:[%s578_s0 + $0x8] sm:$0xff]  ;;  %v152_v53 = vld [vmem:[%s578_s0 + $0x10] sm:$0xff]  ;;  %v161_v54 = vld [vmem:[%s578_s0 + $0x58] sm:$0xff] }
   0xe   :  { %328 = vmatpush.msra.mxu2 %v62_v6  ;;  %75 = vmatpush.msra.mxu0 %v62_v6  ;;  %v153_v55 = vld [vmem:[%s578_s0 + $0x18] sm:$0xff]  ;;  %v162_v56 = vld [vmem:[%s578_s0 + $0x60] sm:$0xff]  ;;  %v163_v58 = vld [vmem:[%s578_s0 + $0x68] sm:$0xff] }
   0xf   :  { %v154_v57 = vld [vmem:[%s578_s0 + $0x20] sm:$0xff]  ;;  %v155_v59 = vld [vmem:[%s578_s0 + $0x28] sm:$0xff]  ;;  %v164_v60 = vld [vmem:[%s578_s0 + $0x70] sm:$0xff] }
  0x10   :  { %329 = vmatpush.msra.mxu2 %v61_v7  ;;  %76 = vmatpush.msra.mxu0 %v61_v7  ;;  %v156_v61 = vld [vmem:[%s578_s0 + $0x30] sm:$0xff]  ;;  %v165_v62 = vld [vmem:[%s578_s0 + $0x78] sm:$0xff]  ;;  %v354_v0 = vld [vmem:[%s577_s3] ss:$0 sm:$0xff] }
  0x11   :  { %v157_v63 = vld [vmem:[%s578_s0 + $0x38] sm:$0xff] }
  0x12   :  { %330 = vmatpush.msra.mxu2 %v60_v8  ;;  %77 = vmatpush.msra.mxu0 %v60_v8 }
  0x14   :  { %331 = vmatpush.msra.mxu2 %v59_v9  ;;  %78 = vmatpush.msra.mxu0 %v59_v9 }
  0x16   :  { %332 = vmatpush.msra.mxu2 %v58_v10  ;;  %79 = vmatpush.msra.mxu0 %v58_v10 }
  0x18   :  { %333 = vmatpush.msra.mxu2 %v57_v11  ;;  %80 = vmatpush.msra.mxu0 %v57_v11 }
  0x1a   :  { %334 = vmatpush.msra.mxu2 %v56_v12  ;;  %81 = vmatpush.msra.mxu0 %v56_v12 }
  0x1c   :  { %335 = vmatpush.msra.mxu2 %v55_v13  ;;  %82 = vmatpush.msra.mxu0 %v55_v13 }
  0x1e   :  { %336 = vmatpush.msra.mxu2 %v54_v14  ;;  %83 = vmatpush.msra.mxu0 %v54_v14 }
  0x20   :  { %337 = vmatpush.msra.mxu2 %v53_v15  ;;  %84 = vmatpush.msra.mxu0 %v53_v15 }
  0x21   :  { %109 = vmatmul.f32.vlgmr.msra.gmra.mxu2 %v45_v16  ;;  %85 = vmatmul.f32.vlgmr.msra.gmra.mxu0 %v37_v17 }
  0x29   :  { %112 = vmatmul.f32.gmra.mxu2 %v46_v18  ;;  %88 = vmatmul.f32.gmra.mxu0 %v38_v19 }
  0x31   :  { %115 = vmatmul.f32.gmra.mxu2 %v47_v20  ;;  %91 = vmatmul.f32.gmra.mxu0 %v39_v21 }
  0x39   :  { %118 = vmatmul.f32.gmra.mxu2 %v48_v22  ;;  %94 = vmatmul.f32.gmra.mxu0 %v40_v23 }
  0x41   :  { %121 = vmatmul.f32.gmra.mxu2 %v49_v24  ;;  %97 = vmatmul.f32.gmra.mxu0 %v41_v25 }
  0x49   :  { %124 = vmatmul.f32.gmra.mxu2 %v50_v26  ;;  %100 = vmatmul.f32.gmra.mxu0 %v42_v27 }
  0x51   :  { %127 = vmatmul.f32.gmra.mxu2 %v51_v28  ;;  %103 = vmatmul.f32.gmra.mxu0 %v43_v29 }
  0x59   :  { %130 = vmatmul.f32.gmra.mxu2 %v52_v30  ;;  %106 = vmatmul.f32.gmra.mxu0 %v44_v31 }
  0x9e   :  { %v86_v33 = vpop.f32.mrf.mxu0 }
  0xa4   :  { %v110_v32 = vpop.f32.mrf.mxu2 }
  0xa6   :  { %v89_v35 = vpop.f32.mrf.mxu0 }
  0xac   :  { %v113_v34 = vpop.f32.mrf.mxu2 }
  0xae   :  { %v92_v37 = vpop.f32.mrf.mxu0 }
  0xb4   :  { %v116_v36 = vpop.f32.mrf.mxu2 }
  0xb6   :  { %v95_v39 = vpop.f32.mrf.mxu0 }
  0xbc   :  { %v119_v38 = vpop.f32.mrf.mxu2 }
  0xbe   :  { %v98_v42 = vpop.f32.mrf.mxu0 }
  0xc4   :  { %v122_v40 = vpop.f32.mrf.mxu2 }
  0xc6   :  { %v101_v44 = vpop.f32.mrf.mxu0 }
  0xcc   :  { %v125_v41 = vpop.f32.mrf.mxu2 }
  0xce   :  { %v104_v46 = vpop.f32.mrf.mxu0 }
  0xd4   :  { %v128_v43 = vpop.f32.mrf.mxu2 }
  0xd6   :  { %v107_v47 = vpop.f32.mrf.mxu0 }
  0xdc   :  { %v131_v45 = vpop.f32.mrf.mxu2 }
  0xdd   :  { %166 = vmatpush.msra.mxu1 %v131_v45  ;;  %338 = vmatpush.msra.mxu3 %v131_v45 }
  0xdf   :  { %167 = vmatpush.msra.mxu1 %v128_v43  ;;  %339 = vmatpush.msra.mxu3 %v128_v43 }
  0xe1   :  { %168 = vmatpush.msra.mxu1 %v125_v41  ;;  %340 = vmatpush.msra.mxu3 %v125_v41 }
  0xe3   :  { %169 = vmatpush.msra.mxu1 %v122_v40  ;;  %341 = vmatpush.msra.mxu3 %v122_v40 }
  0xe5   :  { %170 = vmatpush.msra.mxu1 %v119_v38  ;;  %342 = vmatpush.msra.mxu3 %v119_v38 }
  0xe7   :  { %171 = vmatpush.msra.mxu1 %v116_v36  ;;  %343 = vmatpush.msra.mxu3 %v116_v36 }
  0xe9   :  { %172 = vmatpush.msra.mxu1 %v113_v34  ;;  %344 = vmatpush.msra.mxu3 %v113_v34 }
  0xeb   :  { %173 = vmatpush.msra.mxu1 %v110_v32  ;;  %345 = vmatpush.msra.mxu3 %v110_v32 }
  0xed   :  { %174 = vmatpush.msra.mxu1 %v107_v47  ;;  %346 = vmatpush.msra.mxu3 %v107_v47 }
  0xef   :  { %175 = vmatpush.msra.mxu1 %v104_v46  ;;  %347 = vmatpush.msra.mxu3 %v104_v46 }
  0xf1   :  { %176 = vmatpush.msra.mxu1 %v101_v44  ;;  %348 = vmatpush.msra.mxu3 %v101_v44 }
  0xf3   :  { %177 = vmatpush.msra.mxu1 %v98_v42  ;;  %349 = vmatpush.msra.mxu3 %v98_v42 }
  0xf5   :  { %178 = vmatpush.msra.mxu1 %v95_v39  ;;  %350 = vmatpush.msra.mxu3 %v95_v39 }
  0xf7   :  { %179 = vmatpush.msra.mxu1 %v92_v37  ;;  %351 = vmatpush.msra.mxu3 %v92_v37 }
  0xf9   :  { %180 = vmatpush.msra.mxu1 %v89_v35  ;;  %352 = vmatpush.msra.mxu3 %v89_v35 }
  0xfb   :  { %181 = vmatpush.msra.mxu1 %v86_v33  ;;  %353 = vmatpush.msra.mxu3 %v86_v33 }
  0xfc   :  { %206 = vmatmul.f32.vlgmr.msra.gmra.mxu3 %v158_v48  ;;  %182 = vmatmul.f32.vlgmr.msra.gmra.mxu1 %v150_v49 }
 0x104   :  { %209 = vmatmul.f32.gmra.mxu3 %v159_v50  ;;  %185 = vmatmul.f32.gmra.mxu1 %v151_v51 }
 0x10c   :  { %212 = vmatmul.f32.gmra.mxu3 %v160_v52  ;;  %188 = vmatmul.f32.gmra.mxu1 %v152_v53 }
 0x114   :  { %215 = vmatmul.f32.gmra.mxu3 %v161_v54  ;;  %191 = vmatmul.f32.gmra.mxu1 %v153_v55 }
 0x11c   :  { %218 = vmatmul.f32.gmra.mxu3 %v162_v56  ;;  %194 = vmatmul.f32.gmra.mxu1 %v154_v57 }
 0x124   :  { %221 = vmatmul.f32.gmra.mxu3 %v163_v58  ;;  %197 = vmatmul.f32.gmra.mxu1 %v155_v59 }
 0x12c   :  { %224 = vmatmul.f32.gmra.mxu3 %v164_v60  ;;  %200 = vmatmul.f32.gmra.mxu1 %v156_v61 }
 0x134   :  { %227 = vmatmul.f32.gmra.mxu3 %v165_v62  ;;  %203 = vmatmul.f32.gmra.mxu1 %v157_v63 }
 0x179   :  { %v183_v1 = vpop.f32.mrf.mxu1 }
 0x17a   :  { %v286_v2 = vadd.f32 %v354_v0, %v183_v1 }
 0x17c   :  { %302 = vst [vmem:[%s579_s4] sm:$0xff] %v286_v2 }
 0x17f   :  { %v207_v3 = vpop.f32.mrf.mxu3 }
 0x180   :  { %v294_v4 = vadd.f32 %v354_v0, %v207_v3 }
 0x181   :  { %v186_v5 = vpop.f32.mrf.mxu1 }
 0x182   :  { %310 = vst [vmem:[%s579_s4 + $0x40] sm:$0xff] %v294_v4  ;;  %v287_v6 = vadd.f32 %v354_v0, %v186_v5 }
 0x184   :  { %303 = vst [vmem:[%s579_s4 + $0x8] sm:$0xff] %v287_v6 }
 0x187   :  { %v210_v7 = vpop.f32.mrf.mxu3 }
 0x188   :  { %v295_v8 = vadd.f32 %v354_v0, %v210_v7 }
 0x189   :  { %v189_v9 = vpop.f32.mrf.mxu1 }
 0x18a   :  { %311 = vst [vmem:[%s579_s4 + $0x48] sm:$0xff] %v295_v8  ;;  %v288_v10 = vadd.f32 %v354_v0, %v189_v9 }
 0x18c   :  { %304 = vst [vmem:[%s579_s4 + $0x10] sm:$0xff] %v288_v10 }
 0x18f   :  { %v213_v11 = vpop.f32.mrf.mxu3 }
 0x190   :  { %v296_v12 = vadd.f32 %v354_v0, %v213_v11 }
 0x191   :  { %v192_v13 = vpop.f32.mrf.mxu1 }
 0x192   :  { %312 = vst [vmem:[%s579_s4 + $0x50] sm:$0xff] %v296_v12  ;;  %v289_v14 = vadd.f32 %v354_v0, %v192_v13 }
 0x194   :  { %305 = vst [vmem:[%s579_s4 + $0x18] sm:$0xff] %v289_v14 }
 0x197   :  { %v216_v15 = vpop.f32.mrf.mxu3 }
 0x198   :  { %v297_v16 = vadd.f32 %v354_v0, %v216_v15 }
 0x199   :  { %v195_v17 = vpop.f32.mrf.mxu1 }
 0x19a   :  { %313 = vst [vmem:[%s579_s4 + $0x58] sm:$0xff] %v297_v16  ;;  %v290_v18 = vadd.f32 %v354_v0, %v195_v17 }
 0x19c   :  { %306 = vst [vmem:[%s579_s4 + $0x20] sm:$0xff] %v290_v18 }
 0x19f   :  { %v219_v19 = vpop.f32.mrf.mxu3 }
 0x1a0   :  { %v298_v20 = vadd.f32 %v354_v0, %v219_v19 }
 0x1a1   :  { %v198_v21 = vpop.f32.mrf.mxu1 }
 0x1a2   :  { %314 = vst [vmem:[%s579_s4 + $0x60] sm:$0xff] %v298_v20  ;;  %v291_v22 = vadd.f32 %v354_v0, %v198_v21 }
 0x1a4   :  { %307 = vst [vmem:[%s579_s4 + $0x28] sm:$0xff] %v291_v22 }
 0x1a7   :  { %v222_v23 = vpop.f32.mrf.mxu3 }
 0x1a8   :  { %v299_v24 = vadd.f32 %v354_v0, %v222_v23 }
 0x1a9   :  { %v201_v25 = vpop.f32.mrf.mxu1 }
 0x1aa   :  { %315 = vst [vmem:[%s579_s4 + $0x68] sm:$0xff] %v299_v24  ;;  %v292_v26 = vadd.f32 %v354_v0, %v201_v25 }
 0x1ac   :  { %308 = vst [vmem:[%s579_s4 + $0x30] sm:$0xff] %v292_v26 }
 0x1af   :  { %v225_v27 = vpop.f32.mrf.mxu3 }
 0x1b0   :  { %v300_v28 = vadd.f32 %v354_v0, %v225_v27 }
 0x1b1   :  { %v204_v29 = vpop.f32.mrf.mxu1 }
 0x1b2   :  { %316 = vst [vmem:[%s579_s4 + $0x70] sm:$0xff] %v300_v28  ;;  %v293_v30 = vadd.f32 %v354_v0, %v204_v29 }
 0x1b4   :  { %309 = vst [vmem:[%s579_s4 + $0x38] sm:$0xff] %v293_v30 }
 0x1b7   :  { %v228_v31 = vpop.f32.mrf.mxu3 }
 0x1b8   :  { %v301_v32 = vadd.f32 %v354_v0, %v228_v31 }
 0x1ba   :  { %317 = vst [vmem:[%s579_s4 + $0x78] sm:$0xff] %v301_v32 }

</bundles_post_ra>
